<compile_context>
chip_gen: v6e
topology: v6e:2x2x1
jax: 0.10.0
libtpu: 0.0.40
codegen_flags: <defaults>
</compile_context>

<pallas_src>
import functools

import jax
import jax.numpy as jnp
from jax.experimental import pallas as pl
from jax.experimental.pallas import tpu as pltpu


HP = 128                    # padded hidden width (native TPU lane count)
IN_PAD = 8                  # x / W1 contraction dim padded to one sublane tile
OFF_W2 = IN_PAD             # packed-row offsets
OFF_W3 = IN_PAD + HP
OFF_B = IN_PAD + 2 * HP
PACK_ROWS = OFF_B + 8       # 272
BATCH_BLOCK_MAX = 2048      # max rows per grid step (review: 1024-2048)
SMALL_BATCH_MAX = 256       # <= this: single whole-array-in-VMEM block, no grid


def _actor_mlp_kernel(max_action, x_ref, p_ref, out_ref):
    """x_ref: (bb, 8) f32 (cols >= in_size are zero).
       p_ref: (272, 128) f32 packed params (see pack_params).
       out_ref: (bb, out_size) f32."""
    out_size = out_ref.shape[1]

    # Layer 1 on the MXU: (bb,8) @ (8,128).  Padded x cols hit zero W1 rows -> exact.
    h1 = jnp.dot(x_ref[...], p_ref[0:OFF_W2, :], preferred_element_type=jnp.float32)
    h1 = jnp.maximum(h1 + p_ref[OFF_B:OFF_B + 1, :], 0.0)

    # Layer 2 on the MXU: (bb,128) @ (128,128).
    h2 = jnp.dot(h1, p_ref[OFF_W2:OFF_W3, :], preferred_element_type=jnp.float32)
    h2 = jnp.maximum(h2 + p_ref[OFF_B + 1:OFF_B + 2, :], 0.0)

    # Layer 3 on the MXU (full 128-lane dot; MXU has huge slack here), then keep only
    # the real output columns BEFORE bias/tanh/store so EUP work and the HBM writeback
    # stay ~out_size/128 of what they were.
    h3 = jnp.dot(h2, p_ref[OFF_W3:OFF_B, :], preferred_element_type=jnp.float32)
    h3 = h3[:, 0:out_size] + p_ref[OFF_B + 2:OFF_B + 3, 0:out_size]
    out_ref[...] = (jnp.tanh(h3) * max_action).astype(out_ref.dtype)


def pack_params(params):
    """Zero-pad all weights/biases to lane-dense tiles and pack into one (272,128) slab.

    Call ONCE per parameter update (hoisted out of the forward) and reuse the result."""
    w1, b1 = params["w1"], params["b1"]   # (in, hid), (1, hid)
    w2, b2 = params["w2"], params["b2"]   # (hid, hid), (1, hid)
    w3, b3 = params["w3"], params["b3"]   # (hid, out), (1, out)
    in_size, hidden = w1.shape
    out_size = w3.shape[1]
    assert in_size <= IN_PAD and hidden <= HP and out_size <= HP

    w1p = jnp.zeros((IN_PAD, HP), jnp.float32).at[:in_size, :hidden].set(w1)
    w2p = jnp.zeros((HP, HP), jnp.float32).at[:hidden, :hidden].set(w2)
    w3p = jnp.zeros((HP, HP), jnp.float32).at[:hidden, :out_size].set(w3)
    bp = jnp.zeros((8, HP), jnp.float32)
    bp = bp.at[0, :hidden].set(b1[0])
    bp = bp.at[1, :hidden].set(b2[0])
    bp = bp.at[2, :out_size].set(b3[0])
    return jnp.concatenate([w1p, w2p, w3p, bp], axis=0)   # (272, 128) f32


def _round_up(n, m):
    return ((n + m - 1) // m) * m


def actor_nn_forward(x, packed, *, in_size, out_size, max_action=2.0):
    """x: (B, in_size) or (in_size,).  packed: output of pack_params (pre-packed)."""
    squeeze = x.ndim == 1
    if squeeze:
        x = x[None, :]
    B = x.shape[0]
    assert x.shape[1] == in_size

    kernel = functools.partial(_actor_mlp_kernel, float(max_action))

    if B <= SMALL_BATCH_MAX:
        # Inference-style batch: one whole-array VMEM block, no grid machinery.
        grid_steps = 1
        bb = _round_up(B, 8)
    else:
        # Training-scale batch: always >= 2 grid steps (both v7x TensorCores take work),
        # block capped at 2048 rows, batch padded so non-divisible B stays on this path.
        grid_steps = max(2, -(-B // BATCH_BLOCK_MAX))
        bb = _round_up(-(-B // grid_steps), 8)
    Bp = grid_steps * bb

    # Zero-pad x to (Bp, 8): layer 1 becomes a clean (bb,8)@(8,128) MXU dot and the x
    # DMA is sublane-tile friendly.  Padded rows produce garbage that is sliced off.
    xp = jnp.zeros((Bp, IN_PAD), jnp.float32).at[:B, :in_size].set(
        x.astype(jnp.float32))

    if grid_steps == 1:
        out = pl.pallas_call(
            kernel,
            out_shape=jax.ShapeDtypeStruct((Bp, out_size), jnp.float32),
            in_specs=[
                pl.BlockSpec(memory_space=pltpu.MemorySpace.VMEM),
                pl.BlockSpec(memory_space=pltpu.MemorySpace.VMEM),
            ],
            out_specs=pl.BlockSpec(memory_space=pltpu.MemorySpace.VMEM),
        )(xp, packed)
    else:
        out = pl.pallas_call(
            kernel,
            out_shape=jax.ShapeDtypeStruct((Bp, out_size), jnp.float32),
            grid=(grid_steps,),
            in_specs=[
                pl.BlockSpec((bb, IN_PAD), lambda i: (i, 0)),
                # Constant index_map -> the 136 KiB weight slab is DMA'd once and stays
                # resident in VMEM across all grid steps.
                pl.BlockSpec((PACK_ROWS, HP), lambda i: (0, 0)),
            ],
            out_specs=pl.BlockSpec((bb, out_size), lambda i: (i, 0)),
            compiler_params=pltpu.CompilerParams(
                dimension_semantics=("parallel",)),   # v7x: both TCs split the batch
        )(xp, packed)

    out = out[:B]
    if squeeze:
        out = out[0]
    return out


def init_params(key, input_size=3, hidden_size=56, output_size=1):
    """Deterministic synthetic params, stored (in_features, out_features)."""
    k1, k2, k3, k4, k5, k6 = jax.random.split(key, 6)
    s1 = 1.0 / jnp.sqrt(input_size)
    s2 = 1.0 / jnp.sqrt(hidden_size)
    return {
        "w1": jax.random.normal(k1, (input_size, hidden_size), jnp.float32) * s1,
        "b1": jax.random.normal(k2, (1, hidden_size), jnp.float32) * 0.1,
        "w2": jax.random.normal(k3, (hidden_size, hidden_size), jnp.float32) * s2,
        "b2": jax.random.normal(k4, (1, hidden_size), jnp.float32) * 0.1,
        "w3": jax.random.normal(k5, (hidden_size, output_size), jnp.float32) * s2,
        "b3": jax.random.normal(k6, (1, output_size), jnp.float32) * 0.1,
    }


def _reference_forward(x, p, max_action=2.0):
    hi = jax.lax.Precision.HIGHEST
    h1 = jnp.maximum(jnp.dot(x, p["w1"], precision=hi) + p["b1"], 0.0)
    h2 = jnp.maximum(jnp.dot(h1, p["w2"], precision=hi) + p["b2"], 0.0)
    return jnp.tanh(jnp.dot(h2, p["w3"], precision=hi) + p["b3"]) * max_action


if __name__ == "__main__":
    key = jax.random.PRNGKey(0)
    kx1, kx2, kx3, kp = jax.random.split(key, 4)

    input_size, hidden_size, output_size = 3, 56, 1
    max_action = 2.0
    params = init_params(kp, input_size, hidden_size, output_size)

    # Pack once (hoisted out of the forward per perf review) and reuse across calls.
    packed = pack_params(params)
    fwd = jax.jit(functools.partial(actor_nn_forward, in_size=input_size,
                                    out_size=output_size, max_action=max_action))

    # 1) Small (inference-style) batch -> single-block, no-grid path.
    x_small = jax.random.normal(kx1, (8, input_size), jnp.float32)
    out_small = jax.block_until_ready(fwd(x_small, packed))
    ref_small = _reference_forward(x_small, params, max_action)
    assert out_small.shape == (8, output_size)
    assert jnp.allclose(out_small, ref_small, atol=1e-4, rtol=1e-4), "small-batch mismatch"

    # 2) Mid batch, not a multiple of the block -> gridded path with padding, 2 steps.
    x_mid = jax.random.normal(kx2, (1000, input_size), jnp.float32)
    out_mid = jax.block_until_ready(fwd(x_mid, packed))
    ref_mid = _reference_forward(x_mid, params, max_action)
    assert out_mid.shape == (1000, output_size)
    assert jnp.allclose(out_mid, ref_mid, atol=1e-4, rtol=1e-4), "mid-batch mismatch"

    # 3) Training-scale batch -> gridded path, 3 steps of <= 2048 rows (padded).
    x_big = jax.random.normal(kx3, (4100, input_size), jnp.float32)
    out_big = jax.block_until_ready(fwd(x_big, packed))
    ref_big = _reference_forward(x_big, params, max_action)
    assert out_big.shape == (4100, output_size)
    assert jnp.allclose(out_big, ref_big, atol=1e-4, rtol=1e-4), "big-batch mismatch"

    print("KERNEL_OK")
</pallas_src>

<mosaic_0001>
module attributes {stable_mosaic.version = 11 : i64} {
  func.func @_actor_mlp_kernel(%arg0: memref<8x8xf32, #tpu.memory_space<vmem>>, %arg1: memref<272x128xf32, #tpu.memory_space<vmem>>, %arg2: memref<8x1xf32, #tpu.memory_space<vmem>>) attributes {dimension_semantics = [], scalar_prefetch = 0 : i64, scratch_operands = 0 : i64, tpu.core_type = #tpu.core_type<tc>} {
    %c0 = arith.constant 0 : index
    %c0_0 = arith.constant 0 : index
    %0 = vector.load %arg0[%c0, %c0_0] : memref<8x8xf32, #tpu.memory_space<vmem>>, vector<8x8xf32>
    %c0_1 = arith.constant 0 : index
    %c0_2 = arith.constant 0 : index
    %1 = vector.load %arg1[%c0_1, %c0_2] : memref<272x128xf32, #tpu.memory_space<vmem>>, vector<8x128xf32>
    %cst = arith.constant dense<0.000000e+00> : vector<8x128xf32>
    %2 = tpu.matmul %0, %1, %cst {dimension_numbers = #tpu.dot_dimension_numbers<[1], [0], [0], [1], [0, 0, 1, 1], [], []>} : vector<8x8xf32>, vector<8x128xf32>, vector<8x128xf32> -> vector<8x128xf32>
    %c264 = arith.constant 264 : index
    %c0_3 = arith.constant 0 : index
    %3 = vector.load %arg1[%c264, %c0_3] : memref<272x128xf32, #tpu.memory_space<vmem>>, vector<1x128xf32>
    %4 = vector.broadcast %3 : vector<1x128xf32> to vector<8x128xf32>
    %5 = arith.addf %2, %4 : vector<8x128xf32>
    %cst_4 = arith.constant 0.000000e+00 : f32
    %6 = vector.broadcast %cst_4 : f32 to vector<8x128xf32>
    %7 = arith.maximumf %5, %6 : vector<8x128xf32>
    %c8 = arith.constant 8 : index
    %c0_5 = arith.constant 0 : index
    %8 = vector.load %arg1[%c8, %c0_5] : memref<272x128xf32, #tpu.memory_space<vmem>>, vector<128x128xf32>
    %cst_6 = arith.constant dense<0.000000e+00> : vector<8x128xf32>
    %9 = tpu.matmul %7, %8, %cst_6 {dimension_numbers = #tpu.dot_dimension_numbers<[1], [0], [0], [1], [0, 0, 1, 1], [], []>} : vector<8x128xf32>, vector<128x128xf32>, vector<8x128xf32> -> vector<8x128xf32>
    %c265 = arith.constant 265 : index
    %c0_7 = arith.constant 0 : index
    %10 = vector.load %arg1[%c265, %c0_7] : memref<272x128xf32, #tpu.memory_space<vmem>>, vector<1x128xf32>
    %11 = vector.broadcast %10 : vector<1x128xf32> to vector<8x128xf32>
    %12 = arith.addf %9, %11 : vector<8x128xf32>
    %cst_8 = arith.constant 0.000000e+00 : f32
    %13 = vector.broadcast %cst_8 : f32 to vector<8x128xf32>
    %14 = arith.maximumf %12, %13 : vector<8x128xf32>
    %c136 = arith.constant 136 : index
    %c0_9 = arith.constant 0 : index
    %15 = vector.load %arg1[%c136, %c0_9] : memref<272x128xf32, #tpu.memory_space<vmem>>, vector<128x128xf32>
    %cst_10 = arith.constant dense<0.000000e+00> : vector<8x128xf32>
    %16 = tpu.matmul %14, %15, %cst_10 {dimension_numbers = #tpu.dot_dimension_numbers<[1], [0], [0], [1], [0, 0, 1, 1], [], []>} : vector<8x128xf32>, vector<128x128xf32>, vector<8x128xf32> -> vector<8x128xf32>
    %17 = vector.extract_strided_slice %16 {offsets = [0, 0], sizes = [8, 1], strides = [1, 1]} : vector<8x128xf32> to vector<8x1xf32>
    %c266 = arith.constant 266 : index
    %c0_11 = arith.constant 0 : index
    %18 = vector.load %arg1[%c266, %c0_11] : memref<272x128xf32, #tpu.memory_space<vmem>>, vector<1x1xf32>
    %19 = vector.broadcast %18 : vector<1x1xf32> to vector<8x1xf32>
    %20 = arith.addf %17, %19 : vector<8x1xf32>
    %21 = math.tanh %20 : vector<8x1xf32>
    %cst_12 = arith.constant 2.000000e+00 : f32
    %22 = vector.broadcast %cst_12 : f32 to vector<8x1xf32>
    %23 = arith.mulf %21, %22 : vector<8x1xf32>
    %c0_13 = arith.constant 0 : index
    %c0_14 = arith.constant 0 : index
    %24 = vector.load %arg2[%c0_13, %c0_14] : memref<8x1xf32, #tpu.memory_space<vmem>>, vector<8x1xf32>
    tpu.vector_store %arg2[%c0_13, %c0_14], %23 {strides = array<i32>} : memref<8x1xf32, #tpu.memory_space<vmem>>, vector<8x1xf32>,
    return
  }
}

</mosaic_0001>

<bundles_post_ra>
// kernel: actor_nn_forward.1
= control target key start
LH: loop header
LB: loop body
LE: loop exit
PB: predicated region body
PF: predicated region fallthrough
CT: control target
= control target key end

     0   :  { %7 = vsyncpa [#allocation3], 0  ;;  %s444_s9 = smov [#allocation2]   ;;  %s512_s0 = inlined_call_operand.vmem [shape: f32[8,8], index: 0, kind: input, shape index: {}]   ;;  %s513_s1 = inlined_call_operand.hbm [shape: f32[272,128], index: 1, kind: input, shape index: {}]   ;;  %s514_s2 = inlined_call_operand.vmem [shape: f32[8,1], index: 2, kind: output, shape index: {}]  }
   0x1   :  { %s15_s10 = sshll.u32 %s444_s9, 4  ;;  %s16_s10 = int_to_ptr.vmem [resolvable:$true] %s15_s10 }
   0x2   :  { %s430_s11 = scalar_lea.vmem %s16_s10, 4352  ;;  %p435_p1 = scmp.lt.s32.totalorder %s16_s10, %s16_s10 }
   0x3   :  { %p431_p0 = scmp.ne.s32.totalorder %s16_s10, %s430_s11  ;;  %p436_p2 = scmp.lt.s32.totalorder %s430_s11, %s430_s11 }
   0x5   :  { %p437_p3 = por %p436_p2, %p435_p1 }
   0x7   :  { %p438_p4 = pnand %p437_p3, %p431_p0 }
   0x9   :  { %441 = shalt.err (!%p438_p4)
}
   0xa   :  { %s445_s12 = smov 128   ;;  %s446_s13 = smov 8  }
   0xb   :  { %21 = dma.hbm_to_vmem [thread:$0]  %s513_s1, 4352, %s16_s10, [#allocation3], %s445_s12, %s445_s12, %s446_s13  }
   0xc   :  { %442 = dma.done.wait [#allocation3], 4352  }
   0xd   :  { %443 = vsyncadd [#allocation3], 4294962944  ;;  %v447_v0 = vmov 0.0   ;;  %vm448_vm0 = vmmov 0   ;;  %vm32_vm1 = vcmask 64512   ;;  %v26_v1 = vld [vmem:[#allocation2] sm:$0xff] }
   0xe   :  { %340 = vmatprep.subr.mxu0 %v447_v0  ;;  %342 = vmatprep.mubr.msk.f32.mxu0 %vm448_vm0, %v447_v0  ;;  %v25_v2 = vld [vmem:[%s512_s0] sm:$0xff]  ;;  %v121_v4 = vld [vmem:[#allocation2 + $0x78] sm:$0xff]  ;;  %v120_v5 = vld [vmem:[#allocation2 + $0x70] sm:$0xff]  ;;  %vm293_vm2 = vcmask 7168  }
   0xf   :  { %345 = vmatprep.subr.mxu1 %v447_v0  ;;  %377 = vmatprep.mubr.msk.f32.mxu1 %vm448_vm0, %v447_v0  ;;  %v122_v3 = vld [vmem:[#allocation2 + $0x80] sm:$0xff]  ;;  %v119_v6 = vld [vmem:[#allocation2 + $0x68] sm:$0xff]  ;;  %v117_v8 = vld [vmem:[#allocation2 + $0x58] sm:$0xff] }
  0x10   :  { %341 = vmatpush3.msra.mxu0 %v26_v1  ;;  %346 = vmatpush3.msra.mxu1 %v122_v3  ;;  %v118_v7 = vld [vmem:[#allocation2 + $0x60] sm:$0xff]  ;;  %v116_v9 = vld [vmem:[#allocation2 + $0x50] sm:$0xff]  ;;  %v115_v10 = vld [vmem:[#allocation2 + $0x48] sm:$0xff] }
  0x11   :  { %343 = vmatmul.mubr.msk.f32.vlgmr.msra.gmra.mxu0 %vm32_vm1, %v25_v2  ;;  %347 = vmatprep.subr.mxu1 %v447_v0  ;;  %v114_v11 = vld [vmem:[#allocation2 + $0x40] sm:$0xff]  ;;  %v113_v12 = vld [vmem:[#allocation2 + $0x38] sm:$0xff]  ;;  %v112_v13 = vld [vmem:[#allocation2 + $0x30] sm:$0xff] }
  0x12   :  { %348 = vmatpush3.msra.mxu1 %v121_v4  ;;  %380 = vmatprep.subr.mxu0 %v447_v0  ;;  %v111_v14 = vld [vmem:[#allocation2 + $0x28] sm:$0xff]  ;;  %v110_v15 = vld [vmem:[#allocation2 + $0x20] sm:$0xff]  ;;  %v109_v16 = vld [vmem:[#allocation2 + $0x18] sm:$0xff] }
  0x13   :  { %349 = vmatprep.subr.mxu1 %v447_v0  ;;  %412 = vmatprep.mubr.msk.f32.mxu0 %vm448_vm0, %v447_v0  ;;  %v108_v17 = vld [vmem:[#allocation2 + $0x10] sm:$0xff]  ;;  %v107_v18 = vld [vmem:[#allocation2 + $0x8] sm:$0xff]  ;;  %v214_v19 = vld [vmem:[#allocation2 + $0x100] sm:$0xff] }
  0x14   :  { %350 = vmatpush3.msra.mxu1 %v120_v5  ;;  %v213_v20 = vld [vmem:[#allocation2 + $0xf8] sm:$0xff]  ;;  %381 = vmatpush3.msra.mxu0 %v214_v19  ;;  %v212_v21 = vld [vmem:[#allocation2 + $0xf0] sm:$0xff]  ;;  %v211_v22 = vld [vmem:[#allocation2 + $0xe8] sm:$0xff] }
  0x15   :  { %351 = vmatprep.subr.mxu1 %v447_v0  ;;  %382 = vmatprep.subr.mxu0 %v447_v0  ;;  %v210_v23 = vld [vmem:[#allocation2 + $0xe0] sm:$0xff]  ;;  %v209_v24 = vld [vmem:[#allocation2 + $0xd8] sm:$0xff]  ;;  %v208_v25 = vld [vmem:[#allocation2 + $0xd0] sm:$0xff] }
  0x16   :  { %352 = vmatpush3.msra.mxu1 %v119_v6  ;;  %383 = vmatpush3.msra.mxu0 %v213_v20  ;;  %v207_v26 = vld [vmem:[#allocation2 + $0xc8] sm:$0xff]  ;;  %v206_v27 = vld [vmem:[#allocation2 + $0xc0] sm:$0xff]  ;;  %v205_v28 = vld [vmem:[#allocation2 + $0xb8] sm:$0xff] }
  0x17   :  { %353 = vmatprep.subr.mxu1 %v447_v0  ;;  %384 = vmatprep.subr.mxu0 %v447_v0  ;;  %v204_v29 = vld [vmem:[#allocation2 + $0xb0] sm:$0xff]  ;;  %v203_v30 = vld [vmem:[#allocation2 + $0xa8] sm:$0xff]  ;;  %v202_v31 = vld [vmem:[#allocation2 + $0xa0] sm:$0xff] }
  0x18   :  { %354 = vmatpush3.msra.mxu1 %v118_v7  ;;  %385 = vmatpush3.msra.mxu0 %v212_v21  ;;  %v300_v32 = vld [vmem:[#allocation2 + $0x108] ss:$0 sm:$0xff]  ;;  %v201_v37 = vld [vmem:[#allocation2 + $0x98] sm:$0xff]  ;;  %v200_v38 = vld [vmem:[#allocation2 + $0x90] sm:$0xff] }
  0x19   :  { %355 = vmatprep.subr.mxu1 %v447_v0  ;;  %386 = vmatprep.subr.mxu0 %v447_v0  ;;  %v199_v39 = vld [vmem:[#allocation2 + $0x88] sm:$0xff] }
  0x1a   :  { %356 = vmatpush3.msra.mxu1 %v117_v8  ;;  %387 = vmatpush3.msra.mxu0 %v211_v22  ;;  %v302_v40 = vld [vmem:[#allocation2 + $0x109] ss:$0 sm:$0xff]  ;;  %v303_v45 = vld [vmem:[#allocation2 + $0x10a] ss:$0 sm:$0xff] }
  0x1b   :  { %357 = vmatprep.subr.mxu1 %v447_v0  ;;  %388 = vmatprep.subr.mxu0 %v447_v0 }
  0x1c   :  { %358 = vmatpush3.msra.mxu1 %v116_v9  ;;  %389 = vmatpush3.msra.mxu0 %v210_v23 }
  0x1d   :  { %359 = vmatprep.subr.mxu1 %v447_v0  ;;  %390 = vmatprep.subr.mxu0 %v447_v0 }
  0x1e   :  { %360 = vmatpush3.msra.mxu1 %v115_v10  ;;  %391 = vmatpush3.msra.mxu0 %v209_v24 }
  0x1f   :  { %361 = vmatprep.subr.mxu1 %v447_v0  ;;  %392 = vmatprep.subr.mxu0 %v447_v0 }
  0x20   :  { %362 = vmatpush3.msra.mxu1 %v114_v11  ;;  %393 = vmatpush3.msra.mxu0 %v208_v25 }
  0x21   :  { %363 = vmatprep.subr.mxu1 %v447_v0  ;;  %394 = vmatprep.subr.mxu0 %v447_v0 }
  0x22   :  { %364 = vmatpush3.msra.mxu1 %v113_v12  ;;  %395 = vmatpush3.msra.mxu0 %v207_v26 }
  0x23   :  { %365 = vmatprep.subr.mxu1 %v447_v0  ;;  %396 = vmatprep.subr.mxu0 %v447_v0 }
  0x24   :  { %366 = vmatpush3.msra.mxu1 %v112_v13  ;;  %397 = vmatpush3.msra.mxu0 %v206_v27 }
  0x25   :  { %367 = vmatprep.subr.mxu1 %v447_v0  ;;  %398 = vmatprep.subr.mxu0 %v447_v0 }
  0x26   :  { %368 = vmatpush3.msra.mxu1 %v111_v14  ;;  %399 = vmatpush3.msra.mxu0 %v205_v28 }
  0x27   :  { %369 = vmatprep.subr.mxu1 %v447_v0  ;;  %400 = vmatprep.subr.mxu0 %v447_v0 }
  0x28   :  { %370 = vmatpush3.msra.mxu1 %v110_v15  ;;  %401 = vmatpush3.msra.mxu0 %v204_v29 }
  0x29   :  { %371 = vmatprep.subr.mxu1 %v447_v0  ;;  %402 = vmatprep.subr.mxu0 %v447_v0 }
  0x2a   :  { %372 = vmatpush3.msra.mxu1 %v109_v16  ;;  %403 = vmatpush3.msra.mxu0 %v203_v30 }
  0x2b   :  { %373 = vmatprep.subr.mxu1 %v447_v0  ;;  %404 = vmatprep.subr.mxu0 %v447_v0 }
  0x2c   :  { %374 = vmatpush3.msra.mxu1 %v108_v17  ;;  %405 = vmatpush3.msra.mxu0 %v202_v31 }
  0x2d   :  { %375 = vmatprep.subr.mxu1 %v447_v0  ;;  %406 = vmatprep.subr.mxu0 %v447_v0 }
  0x2e   :  { %376 = vmatpush3.msra.mxu1 %v107_v18  ;;  %407 = vmatpush3.msra.mxu0 %v201_v37 }
  0x2f   :  { %408 = vmatprep.subr.mxu0 %v447_v0 }
  0x30   :  { %409 = vmatpush3.msra.mxu0 %v200_v38 }
  0x31   :  { %410 = vmatprep.subr.mxu0 %v447_v0 }
  0x32   :  { %411 = vmatpush3.msra.mxu0 %v199_v39 }
  0xd1   :  { %v102_v33 = vpop.f32.mrf.mxu0 }
  0xd2   :  { %v103_v34 = vadd.f32 %v300_v32, %v102_v33 }
  0xd3   :  { %v344_v35 = vpop.f32.mrf.mxu0 }
  0xd4   :  { %v106_v36 = vmax.f32 %v103_v34, 0.0 }
  0xd6   :  { %378 = vmatmul.mubr.f32.vlgmr.msra.gmra.mxu1 %v106_v36 }
 0x196   :  { %v194_v41 = vpop.f32.mrf.mxu1 }
 0x197   :  { %v195_v42 = vadd.f32 %v302_v40, %v194_v41 }
 0x198   :  { %v379_v43 = vpop.f32.mrf.mxu1 }
 0x199   :  { %v198_v44 = vmax.f32 %v195_v42, 0.0 }
 0x19b   :  { %413 = vmatmul.mubr.f32.vlgmr.msra.gmra.mxu0 %v198_v44 }
 0x25b   :  { %v281_v46 = vpop.f32.mrf.mxu0 }
 0x25c   :  { %v290_v47 = vadd.f32 %v303_v45, %v281_v46 }
 0x25d   :  { %v414_v48 = vpop.f32.mrf.mxu0 }
 0x25e   :  { %420 = vtanh.f32 %v290_v47 }
 0x26b   :  { %v421_v49 = vpop.eup %420 }
 0x26c   :  { %v292_v50 = vmul.f32 2.0, %v421_v49 }
 0x26e   :  { %294 = vst.msk [vmem:[%s514_s2] sm:$0xff] %vm293_vm2, %v292_v50 }
 0x26f   :  { %299 = vsyncpa [#allocation3], 1 }

</bundles_post_ra>
